<compile_context>
chip_gen: v6e
topology: v6e:2x2x1
jax: 0.10.0
libtpu: 0.0.40
codegen_flags: <defaults>
</compile_context>

<pallas_src>
import functools
import math

import jax
import jax.numpy as jnp
from jax import lax
from jax.experimental import pallas as pl
from jax.experimental.pallas import tpu as pltpu

PI = math.pi


def _round_up(n, m):
    return ((n + m - 1) // m) * m


def _pick_chunk(total_lanes, target):
    """Largest multiple of 128 that divides `total_lanes` and is <= target."""
    assert total_lanes % 128 == 0, total_lanes
    blocks = total_lanes // 128
    for q in range(min(blocks, max(target // 128, 1)), 0, -1):
        if blocks % q == 0:
            return q * 128
    return 128


def _pad_rows(x, rows):
    pad = rows - x.shape[0]
    return x if pad == 0 else jnp.pad(x, ((0, pad), (0, 0)))


# ---------------------------------------------------------------------------
# Kernel 1: elementwise complex modulation  x_hat * psi_hat[l, j]
# ---------------------------------------------------------------------------
def _modulate_kernel(xr_ref, xi_ref, pr_ref, pi_ref, tr_ref, ti_ref):
    xr = xr_ref[...]            # (1, chunk)  broadcast over the L*J filter rows
    xi = xi_ref[...]
    pr = pr_ref[...]            # (L*J, chunk)
    pi = pi_ref[...]
    tr_ref[...] = xr * pr - xi * pi
    ti_ref[...] = xr * pi + xi * pr


def _modulate(xr, xi, pr, pi, *, lane_chunk=2048):
    lj, nn = pr.shape
    chunk = _pick_chunk(nn, lane_chunk)
    x_spec = pl.BlockSpec((1, chunk), lambda i: (0, i))
    p_spec = pl.BlockSpec((lj, chunk), lambda i: (0, i))
    return pl.pallas_call(
        _modulate_kernel,
        out_shape=(jax.ShapeDtypeStruct((lj, nn), jnp.float32),
                   jax.ShapeDtypeStruct((lj, nn), jnp.float32)),
        grid_spec=pltpu.PrefetchScalarGridSpec(
            num_scalar_prefetch=0,
            grid=(nn // chunk,),
            in_specs=[x_spec, x_spec, p_spec, p_spec],
            out_specs=[p_spec, p_spec],
        ),
        compiler_params=pltpu.CompilerParams(
            dimension_semantics=("parallel",),
        ),
    )(xr, xi, pr, pi)


# ---------------------------------------------------------------------------
# Kernel 2: fused scattering reductions
#   C[m, n] = scale * sum_k (ar[m,k]^2 + ai[m,k]^2) * (br[n,k]^2 + bi[n,k]^2)
# ---------------------------------------------------------------------------
def _scatter_reduce_kernel(ar_ref, ai_ref, br_ref, bi_ref, out_ref, *, scale):
    k = pl.program_id(1)

    @pl.when(k == 0)
    def _():
        out_ref[...] = jnp.zeros_like(out_ref)

    ar = ar_ref[...]
    ai = ai_ref[...]
    br = br_ref[...]
    bi = bi_ref[...]
    apow = ar * ar + ai * ai                    # (M_pad, chunk)   VPU
    bpow = br * br + bi * bi                    # (N_pad, chunk)   VPU
    # Contract over the lane (spatial-frequency) axis of both operands (MXU).
    partial = lax.dot_general(
        apow, bpow,
        dimension_numbers=(((1,), (1,)), ((), ())),
        preferred_element_type=jnp.float32,
    )                                           # (M_pad, N_pad)
    out_ref[...] += partial[None, :, :]

    @pl.when(k == pl.num_programs(1) - 1)
    def _():
        out_ref[...] = out_ref[...] * scale


def _scatter_reduce(a_real, a_imag, b_real, b_imag, *, lane_chunk=2048,
                    num_splits=2):
    m, nn = a_real.shape
    nc = b_real.shape[0]
    assert nn % 128 == 0, "N1*N2 must be a multiple of 128"

    # pad row counts to a multiple of 8 (f32 sublane tile); padded rows are 0
    m_pad = _round_up(m, 8)
    n_pad = _round_up(nc, 8)
    a_real = _pad_rows(a_real, m_pad)
    a_imag = _pad_rows(a_imag, m_pad)
    b_real = _pad_rows(b_real, n_pad)
    b_imag = _pad_rows(b_imag, n_pad)

    # optional split of the reduction axis across TensorCores (helps v7x;
    # harmless single extra tiny writeback on 1-TC chips)
    if num_splits < 1 or nn % (num_splits * 128) != 0:
        num_splits = 1
    per_split = nn // num_splits
    chunk = _pick_chunk(per_split, lane_chunk)
    n_chunks = per_split // chunk

    scale = (1.0 / nn) * (1.0 / (2.0 * PI) ** 2)
    kern = functools.partial(_scatter_reduce_kernel, scale=scale)

    a_spec = pl.BlockSpec((m_pad, chunk), lambda c, k: (0, c * n_chunks + k))
    b_spec = pl.BlockSpec((n_pad, chunk), lambda c, k: (0, c * n_chunks + k))

    out = pl.pallas_call(
        kern,
        out_shape=jax.ShapeDtypeStruct((num_splits, m_pad, n_pad), jnp.float32),
        grid_spec=pltpu.PrefetchScalarGridSpec(
            num_scalar_prefetch=0,
            grid=(num_splits, n_chunks),
            in_specs=[a_spec, a_spec, b_spec, b_spec],
            out_specs=pl.BlockSpec((1, m_pad, n_pad), lambda c, k: (c, 0, 0)),
        ),
        compiler_params=pltpu.CompilerParams(
            dimension_semantics=("parallel", "arbitrary"),
        ),
    )(a_real, a_imag, b_real, b_imag)
    return jnp.sum(out, axis=0)[:m, :nc]


# ---------------------------------------------------------------------------
# Forward pass mirroring scattering_2d_2layers.forward
# ---------------------------------------------------------------------------
def scattering_2d_2layers(x_hat, phi_hat_real, phi_hat_imag,
                          psi_hat_real, psi_hat_imag, second_all=False,
                          *, lane_chunk=2048, num_splits=2):
    """x_hat: (N1,N2,2); phi_hat_*: (N1,N2); psi_hat_*: (L,J,N1,N2)."""
    n1, n2, two = x_hat.shape
    assert two == 2
    L, J = psi_hat_real.shape[:2]
    nn = n1 * n2

    # lane-dense layout: flattened spatial frequencies on the last (lane) axis
    xr = x_hat[:, :, 0].reshape(1, nn)
    xi = x_hat[:, :, 1].reshape(1, nn)
    pr = psi_hat_real.reshape(L * J, nn)
    pim = psi_hat_imag.reshape(L * J, nn)
    phr = phi_hat_real.reshape(1, nn)
    phi_i = phi_hat_imag.reshape(1, nn)

    # layer 1: modulate x_hat with every psi filter (Pallas, elementwise)
    tr, ti = _modulate(xr, xi, pr, pim, lane_chunk=lane_chunk)

    # TODO(synk): no Pallas FFT primitive; 2-D iFFT / FFT stay in XLA.
    u = jnp.fft.ifft2((tr + 1j * ti).reshape(L, J, n1, n2), axes=(-2, -1))
    u_mod = jnp.sqrt(u.real ** 2 + u.imag ** 2 + 1e-8)
    u_hat = jnp.fft.fft2(u_mod, axes=(-2, -1))

    # fused reductions: A rows = [x_hat] ++ Uh_(i,l1) (i slow, l1 fast)
    #                   B rows = [phi_hat] ++ psi_(l2,j) (l2 slow, j fast)
    u_il = jnp.transpose(u_hat, (1, 0, 2, 3)).reshape(J * L, nn)
    a_real = jnp.concatenate([xr, jnp.real(u_il)], axis=0)
    a_imag = jnp.concatenate([xi, jnp.imag(u_il)], axis=0)
    b_real = jnp.concatenate([phr, pr], axis=0)
    b_imag = jnp.concatenate([phi_i, pim], axis=0)

    c = _scatter_reduce(a_real, a_imag, b_real, b_imag,
                        lane_chunk=lane_chunk, num_splits=num_splits)
    # c[m, n] = 1/(2*pi)^2 * mean_{u,v}( |A_m|^2 * |B_n|^2 )

    s0 = c[0:1, 0]                                          # phi coefficient
    cuu = c[1:1 + J * L, 1:1 + L * J].reshape(J, L, L, J)   # [i, l1, l2, j]
    pieces = [s0]
    for i in range(J - 1):
        blk = cuu[i] if second_all else cuu[i, :, :, i + 1:]
        pieces.append(blk.reshape(-1))
    return jnp.concatenate(pieces, axis=0)


# ---------------------------------------------------------------------------
# Pure-JAX reference mirroring the PyTorch forward exactly
# ---------------------------------------------------------------------------
def _reference_forward(x_hat, phi_hat_real, phi_hat_imag,
                       psi_hat_real, psi_hat_imag, second_all=False):
    L, J = psi_hat_real.shape[:2]
    xr = x_hat[:, :, 0]
    xi = x_hat[:, :, 1]
    s0 = (1.0 / (2.0 * PI) ** 2) * jnp.mean(jnp.mean(
        (xr ** 2 + xi ** 2) * (phi_hat_real ** 2 + phi_hat_imag ** 2), 0), 0)
    pieces = [s0.reshape(1)]
    for i in range(J):
        tr = xr * psi_hat_real[:, i] - xi * psi_hat_imag[:, i]
        ti = xr * psi_hat_imag[:, i] + xi * psi_hat_real[:, i]
        t = jnp.fft.ifft2(tr + 1j * ti, axes=(-2, -1))
        m = jnp.sqrt(t.real ** 2 + t.imag ** 2 + 1e-8)
        t2 = jnp.fft.fft2(m, axes=(-2, -1))
        if i < J - 1:
            t3 = (t2.real ** 2 + t2.imag ** 2)[:, None, None]
            if second_all:
                t4 = (psi_hat_real ** 2 + psi_hat_imag ** 2)[None]
            else:
                t4 = (psi_hat_real[:, i + 1:] ** 2 +
                      psi_hat_imag[:, i + 1:] ** 2)[None]
            b = (1.0 / (2.0 * PI) ** 2) * jnp.mean(jnp.mean(t3 * t4, 4), 3)
            pieces.append(b.reshape(-1))
    return jnp.concatenate(pieces, axis=0)


if __name__ == "__main__":
    key = jax.random.PRNGKey(0)
    k1, k2, k3, k4, k5 = jax.random.split(key, 5)

    N, L, J = 16, 4, 3   # 16x16 frequency grid, 4 orientations, 3 scales
    x_hat = jax.random.normal(k1, (N, N, 2), dtype=jnp.float32)
    phi_r = jax.random.normal(k2, (N, N), dtype=jnp.float32)
    phi_i = jax.random.normal(k3, (N, N), dtype=jnp.float32)
    psi_r = jax.random.normal(k4, (L, J, N, N), dtype=jnp.float32)
    psi_i = jax.random.normal(k5, (L, J, N, N), dtype=jnp.float32)

    for second_all in (False, True):
        s = scattering_2d_2layers(x_hat, phi_r, phi_i, psi_r, psi_i,
                                  second_all=second_all)
        s = jax.block_until_ready(s)
        ref = _reference_forward(x_hat, phi_r, phi_i, psi_r, psi_i,
                                 second_all=second_all)
        assert s.shape == ref.shape, (s.shape, ref.shape)
        assert jnp.allclose(s, ref, rtol=5e-3, atol=1e-6), (
            second_all, jnp.max(jnp.abs(s - ref)))
    print("KERNEL_OK")
</pallas_src>

<mosaic_0001>
module attributes {stable_mosaic.version = 11 : i64} {
  func.func @_modulate_kernel(%arg0: i32, %arg1: memref<1x256xf32, #tpu.memory_space<vmem>>, %arg2: memref<1x256xf32, #tpu.memory_space<vmem>>, %arg3: memref<12x256xf32, #tpu.memory_space<vmem>>, %arg4: memref<12x256xf32, #tpu.memory_space<vmem>>, %arg5: memref<12x256xf32, #tpu.memory_space<vmem>>, %arg6: memref<12x256xf32, #tpu.memory_space<vmem>>) attributes {dimension_semantics = [#tpu.dimension_semantics<parallel>], iteration_bounds = array<i64: 1>, scalar_prefetch = 0 : i64, scratch_operands = 0 : i64, tpu.core_type = #tpu.core_type<tc>, window_params = [{transform_indices = @transform_0, window_bounds = array<i64: 1, 256>}, {transform_indices = @transform_1, window_bounds = array<i64: 1, 256>}, {transform_indices = @transform_2, window_bounds = array<i64: 12, 256>}, {transform_indices = @transform_3, window_bounds = array<i64: 12, 256>}, {transform_indices = @transform_4, window_bounds = array<i64: 12, 256>}, {transform_indices = @transform_5, window_bounds = array<i64: 12, 256>}]} {
    %c0 = arith.constant 0 : index
    %c0_0 = arith.constant 0 : index
    %0 = vector.load %arg1[%c0, %c0_0] : memref<1x256xf32, #tpu.memory_space<vmem>>, vector<1x256xf32>
    %c0_1 = arith.constant 0 : index
    %c0_2 = arith.constant 0 : index
    %1 = vector.load %arg2[%c0_1, %c0_2] : memref<1x256xf32, #tpu.memory_space<vmem>>, vector<1x256xf32>
    %c0_3 = arith.constant 0 : index
    %c0_4 = arith.constant 0 : index
    %2 = vector.load %arg3[%c0_3, %c0_4] : memref<12x256xf32, #tpu.memory_space<vmem>>, vector<12x256xf32>
    %c0_5 = arith.constant 0 : index
    %c0_6 = arith.constant 0 : index
    %3 = vector.load %arg4[%c0_5, %c0_6] : memref<12x256xf32, #tpu.memory_space<vmem>>, vector<12x256xf32>
    %4 = vector.broadcast %0 : vector<1x256xf32> to vector<12x256xf32>
    %5 = arith.mulf %4, %2 : vector<12x256xf32>
    %6 = vector.broadcast %1 : vector<1x256xf32> to vector<12x256xf32>
    %7 = arith.mulf %6, %3 : vector<12x256xf32>
    %8 = arith.subf %5, %7 : vector<12x256xf32>
    %c0_7 = arith.constant 0 : index
    %c0_8 = arith.constant 0 : index
    %9 = vector.load %arg5[%c0_7, %c0_8] : memref<12x256xf32, #tpu.memory_space<vmem>>, vector<12x256xf32>
    tpu.vector_store %arg5[%c0_7, %c0_8], %8 {strides = array<i32>} : memref<12x256xf32, #tpu.memory_space<vmem>>, vector<12x256xf32>,
    %10 = vector.broadcast %0 : vector<1x256xf32> to vector<12x256xf32>
    %11 = arith.mulf %10, %3 : vector<12x256xf32>
    %12 = vector.broadcast %1 : vector<1x256xf32> to vector<12x256xf32>
    %13 = arith.mulf %12, %2 : vector<12x256xf32>
    %14 = arith.addf %11, %13 : vector<12x256xf32>
    %c0_9 = arith.constant 0 : index
    %c0_10 = arith.constant 0 : index
    %15 = vector.load %arg6[%c0_9, %c0_10] : memref<12x256xf32, #tpu.memory_space<vmem>>, vector<12x256xf32>
    tpu.vector_store %arg6[%c0_9, %c0_10], %14 {strides = array<i32>} : memref<12x256xf32, #tpu.memory_space<vmem>>, vector<12x256xf32>,
    return
  }
  func.func @transform_0(%arg0: i32) -> (i32, i32) {
    %c0_i32 = arith.constant 0 : i32
    %c0_i32_0 = arith.constant 0 : i32
    return %c0_i32, %arg0 : i32, i32
  }
  func.func @transform_1(%arg0: i32) -> (i32, i32) {
    %c0_i32 = arith.constant 0 : i32
    %c0_i32_0 = arith.constant 0 : i32
    return %c0_i32, %arg0 : i32, i32
  }
  func.func @transform_2(%arg0: i32) -> (i32, i32) {
    %c0_i32 = arith.constant 0 : i32
    %c0_i32_0 = arith.constant 0 : i32
    return %c0_i32, %arg0 : i32, i32
  }
  func.func @transform_3(%arg0: i32) -> (i32, i32) {
    %c0_i32 = arith.constant 0 : i32
    %c0_i32_0 = arith.constant 0 : i32
    return %c0_i32, %arg0 : i32, i32
  }
  func.func @transform_4(%arg0: i32) -> (i32, i32) {
    %c0_i32 = arith.constant 0 : i32
    %c0_i32_0 = arith.constant 0 : i32
    return %c0_i32, %arg0 : i32, i32
  }
  func.func @transform_5(%arg0: i32) -> (i32, i32) {
    %c0_i32 = arith.constant 0 : i32
    %c0_i32_0 = arith.constant 0 : i32
    return %c0_i32, %arg0 : i32, i32
  }
}

</mosaic_0001>

<bundles_post_ra>
// kernel: tpu_custom_call.1
= control target key start
LH: loop header
LB: loop body
LE: loop exit
PB: predicated region body
PF: predicated region fallthrough
CT: control target
= control target key end

     0   :  { %11 = vsyncpa [#allocation3], 0  ;;  %s377_s0 = inlined_call_operand.hbm [shape: f32[1,256], index: 0, kind: input, shape index: {}]   ;;  %s378_s1 = inlined_call_operand.hbm [shape: f32[1,256], index: 1, kind: input, shape index: {}]   ;;  %s379_s2 = inlined_call_operand.hbm [shape: f32[12,256], index: 2, kind: input, shape index: {}]   ;;  %s380_s3 = inlined_call_operand.hbm [shape: f32[12,256], index: 3, kind: input, shape index: {}]   ;;  %s381_s4 = inlined_call_operand.hbm [shape: f32[12,256], index: 4, kind: output, shape index: {0}]   ;;  %s382_s5 = inlined_call_operand.hbm [shape: f32[12,256], index: 5, kind: output, shape index: {1}]  }
   0x1   :  { %12 = vsyncpa [#allocation6], 0 }
   0x2   :  { %13 = vsyncpa [#allocation9], 0 }
   0x3   :  { %14 = vsyncpa [#allocation4], 0 }
   0x4   :  { %15 = vsyncpa [#allocation12], 0  ;;  %s309_s18 = smov [#allocation5]   ;;  %s310_s20 = smov [#allocation2]  }
   0x5   :  { %s32_s19 = sshll.u32 %s309_s18, 4  ;;  %s22_s21 = sshll.u32 %s310_s20, 4  ;;  %s33_s19 = int_to_ptr.vmem [resolvable:$true] %s32_s19  ;;  %s23_s21 = int_to_ptr.vmem [resolvable:$true] %s22_s21 }
   0x6   :  { %s187_s22 = scalar_lea.vmem %s33_s19, 32  ;;  %p192_p1 = scmp.lt.s32.totalorder %s33_s19, %s33_s19 }
   0x7   :  { %p188_p0 = scmp.ne.s32.totalorder %s33_s19, %s187_s22  ;;  %p193_p2 = scmp.lt.s32.totalorder %s187_s22, %s187_s22 }
   0x9   :  { %p194_p3 = por %p193_p2, %p192_p1 }
   0xb   :  { %p195_p4 = pnand %p194_p3, %p188_p0 }
   0xd   :  { %198 = shalt.err (!%p195_p4)
}
   0xe   :  { %35 = dma.hbm_to_vmem [thread:$0]  %s378_s1, 32, %s33_s19, [#allocation6]  }
   0xf   :  { %s207_s25 = scalar_lea.vmem %s23_s21, 32  ;;  %p212_p6 = scmp.lt.s32.totalorder %s23_s21, %s23_s21 }
  0x10   :  { %p208_p5 = scmp.ne.s32.totalorder %s23_s21, %s207_s25  ;;  %p213_p7 = scmp.lt.s32.totalorder %s207_s25, %s207_s25 }
  0x12   :  { %p214_p8 = por %p213_p7, %p212_p6 }
  0x14   :  { %p215_p9 = pnand %p214_p8, %p208_p5 }
  0x16   :  { %218 = shalt.err (!%p215_p9)
}
  0x17   :  { %25 = dma.hbm_to_vmem [thread:$0]  %s377_s0, 32, %s23_s21, [#allocation3]  }
  0x18   :  { %s311_s28 = smov [#allocation7]  }
  0x19   :  { %s41_s29 = sshll.u32 %s311_s28, 4  ;;  %s42_s29 = int_to_ptr.vmem [resolvable:$true] %s41_s29 }
  0x1a   :  { %s227_s30 = scalar_lea.vmem %s42_s29, 512  ;;  %p232_p11 = scmp.lt.s32.totalorder %s42_s29, %s42_s29 }
  0x1b   :  { %p228_p10 = scmp.ne.s32.totalorder %s42_s29, %s227_s30  ;;  %p233_p12 = scmp.lt.s32.totalorder %s227_s30, %s227_s30 }
  0x1d   :  { %p234_p13 = por %p233_p12, %p232_p11 }
  0x1f   :  { %p235_p0 = pnand %p234_p13, %p228_p10 }
  0x21   :  { %238 = shalt.err (!%p235_p0)
}
  0x22   :  { %s312_s1 = smov 256   ;;  %s313_s6 = smov 16  }
  0x23   :  { %47 = dma.hbm_to_vmem [thread:$0]  %s379_s2, 512, %s42_s29, [#allocation6], %s312_s1, %s312_s1, %s313_s6  }
  0x24   :  { %s314_s0 = smov [#allocation8]  }
  0x25   :  { %s53_s9 = sshll.u32 %s314_s0, 4  ;;  %s54_s9 = int_to_ptr.vmem [resolvable:$true] %s53_s9 }
  0x26   :  { %s247_s10 = scalar_lea.vmem %s54_s9, 512  ;;  %p252_p2 = scmp.lt.s32.totalorder %s54_s9, %s54_s9 }
  0x27   :  { %p248_p1 = scmp.ne.s32.totalorder %s54_s9, %s247_s10  ;;  %p253_p3 = scmp.lt.s32.totalorder %s247_s10, %s247_s10 }
  0x29   :  { %p254_p4 = por %p253_p3, %p252_p2 }
  0x2b   :  { %p255_p5 = pnand %p254_p4, %p248_p1 }
  0x2d   :  { %258 = shalt.err (!%p255_p5)
}
  0x2e   :  { %59 = dma.hbm_to_vmem [thread:$0]  %s380_s3, 512, %s54_s9, [#allocation9], %s312_s1, %s312_s1, %s313_s6  }
  0x2f   :  { %299 = dma.done.wait [#allocation3], 32  }
  0x30   :  { %300 = vsyncadd [#allocation3], 4294967264 }
  0x31   :  { %301 = dma.done.wait [#allocation6], 544  }
  0x32   :  { %302 = vsyncadd [#allocation6], 4294966752 }
  0x33   :  { %303 = dma.done.wait [#allocation9], 512  }
  0x34   :  { %304 = vsyncadd [#allocation9], 4294966784  ;;  %v83_v0 = vlaneseq  ;;  %v72_v4 = vld [vmem:[#allocation2] sm:$0x3]  ;;  %v73_v5 = vld [vmem:[#allocation5] sm:$0x3] }
  0x35   :  { %v74_v6 = vld [vmem:[#allocation7] sm:$0xff]  ;;  %v75_v10 = vld [vmem:[#allocation7 + $0x8] sm:$0xff]  ;;  %v76_v14 = vld [vmem:[#allocation7 + $0x10] sm:$0xf]  ;;  %s315_s2 = smov [#allocation10]   ;;  %s316_s13 = smov [#allocation11]  }
  0x36   :  { %v84_v1 = vshrl.u32 %v83_v0, 7  ;;  %v78_v7 = vld [vmem:[#allocation8] sm:$0xff]  ;;  %v79_v11 = vld [vmem:[#allocation8 + $0x8] sm:$0xff]  ;;  %v80_v15 = vld [vmem:[#allocation8 + $0x10] sm:$0xf]  ;;  %s141_s3 = sshll.u32 %s315_s2, 4  ;;  %s142_s3 = int_to_ptr.vmem [resolvable:$true] %s141_s3 }
  0x37   :  { %v77_v16 = vld [vmem:[#allocation7 + $0x18] sm:$0xf]  ;;  %s153_s14 = sshll.u32 %s316_s13, 4  ;;  %s259_s15 = scalar_lea.vmem %s142_s3, 512  ;;  %s154_s14 = int_to_ptr.vmem [resolvable:$true] %s153_s14 }
  0x38   :  { %v85_v2 = vsub.s32 0, %v84_v1  ;;  %v89_v3 = vsub.s32 1, %v84_v1  ;;  %v81_v21 = vld [vmem:[#allocation8 + $0x18] sm:$0xf]  ;;  %p260_p6 = scmp.ne.s32.totalorder %s142_s3, %s259_s15  ;;  %p264_p7 = scmp.lt.s32.totalorder %s142_s3, %s142_s3 }
  0x39   :  { %p265_p8 = scmp.lt.s32.totalorder %s259_s15, %s259_s15 }
  0x3a   :  { %v86_v8 = vrot.slane %v72_v4, %v85_v2  ;;  %v101_v9 = vrot.slane %v73_v5, %v85_v2  ;;  %v90_v12 = vrot.slane %v72_v4, %v89_v3  ;;  %v105_v13 = vrot.slane %v73_v5, %v89_v3 }
  0x3b   :  { %p266_p9 = por %p265_p8, %p264_p7 }
  0x3c   :  { %v93_v17 = vmul.f32 %v86_v8, %v74_v6  ;;  %v108_v18 = vmul.f32 %v101_v9, %v78_v7  ;;  %v94_v19 = vmul.f32 %v90_v12, %v75_v10  ;;  %v109_v20 = vmul.f32 %v105_v13, %v79_v11 }
  0x3d   :  { %v95_v22 = vmul.f32 %v86_v8, %v76_v14  ;;  %v110_v23 = vmul.f32 %v101_v9, %v80_v15  ;;  %v96_v24 = vmul.f32 %v90_v12, %v77_v16  ;;  %v111_v25 = vmul.f32 %v105_v13, %v81_v21  ;;  %p267_p10 = pnand %p266_p9, %p260_p6 }
  0x3e   :  { %v112_v26 = vsub.f32 %v93_v17, %v108_v18  ;;  %v113_v27 = vsub.f32 %v94_v19, %v109_v20  ;;  %v120_v28 = vmul.f32 %v86_v8, %v78_v7  ;;  %v124_v29 = vmul.f32 %v101_v9, %v74_v6 }
  0x3f   :  { %v114_v30 = vsub.f32 %v95_v22, %v110_v23  ;;  %v115_v31 = vsub.f32 %v96_v24, %v111_v25  ;;  %v121_v32 = vmul.f32 %v90_v12, %v79_v11  ;;  %v125_v33 = vmul.f32 %v105_v13, %v75_v10 }
  0x40   :  { %116 = vst [vmem:[#allocation10] sm:$0xff] %v112_v26  ;;  %117 = vst [vmem:[#allocation10 + $0x8] sm:$0xff] %v113_v27  ;;  %v128_v34 = vadd.f32 %v124_v29, %v120_v28  ;;  %v122_v35 = vmul.f32 %v86_v8, %v80_v15  ;;  %v126_v36 = vmul.f32 %v101_v9, %v76_v14 }
  0x41   :  { %v123_v37 = vmul.f32 %v90_v12, %v81_v21  ;;  %118 = vst [vmem:[#allocation10 + $0x10] sm:$0xf] %v114_v30  ;;  %119 = vst [vmem:[#allocation10 + $0x18] sm:$0xf] %v115_v31  ;;  %v129_v38 = vadd.f32 %v125_v33, %v121_v32  ;;  %v127_v39 = vmul.f32 %v105_v13, %v77_v16 }
  0x42   :  { %132 = vst [vmem:[#allocation11] sm:$0xff] %v128_v34  ;;  %v130_v40 = vadd.f32 %v126_v36, %v122_v35 }
  0x43   :  { %270 = shalt.err (!%p267_p10)
}
  0x44   :  { %147 = dma.vmem_to_hbm [thread:$0]  %s142_s3, 512, %s381_s4, [#allocation4], %s312_s1, %s312_s1, %s313_s6   ;;  %133 = vst [vmem:[#allocation11 + $0x8] sm:$0xff] %v129_v38  ;;  %v131_v41 = vadd.f32 %v127_v39, %v123_v37  ;;  %134 = vst [vmem:[#allocation11 + $0x10] sm:$0xf] %v130_v40 }
  0x45   :  { %s279_s18 = scalar_lea.vmem %s154_s14, 512  ;;  %p284_p12 = scmp.lt.s32.totalorder %s154_s14, %s154_s14 }
  0x46   :  { %135 = vst [vmem:[#allocation11 + $0x18] sm:$0xf] %v131_v41  ;;  %p280_p11 = scmp.ne.s32.totalorder %s154_s14, %s279_s18  ;;  %p285_p13 = scmp.lt.s32.totalorder %s279_s18, %s279_s18 }
  0x48   :  { %p286_p0 = por %p285_p13, %p284_p12 }
  0x4a   :  { %p287_p1 = pnand %p286_p0, %p280_p11 }
  0x4c   :  { %290 = shalt.err (!%p287_p1)
}
  0x4d   :  { %159 = dma.vmem_to_hbm [thread:$0]  %s154_s14, 512, %s382_s5, [#allocation12], %s312_s1, %s312_s1, %s313_s6  }
  0x4e   :  { %305 = dma.done.wait [#allocation4], 512  }
  0x4f   :  { %306 = vsyncadd [#allocation4], 4294966784 }
  0x50   :  { %307 = dma.done.wait [#allocation12], 512  }
  0x51   :  { %308 = vsyncadd [#allocation12], 4294966784 }
  0x52   :  { %166 = vsyncpa [#allocation3], 1 }
  0x53   :  { %167 = vsyncpa [#allocation6], 1 }
  0x54   :  { %168 = vsyncpa [#allocation9], 1 }
  0x55   :  { %169 = vsyncpa [#allocation4], 1 }
  0x56   :  { %170 = vsyncpa [#allocation12], 1 }

</bundles_post_ra>
